<compile_context>
chip_gen: v6e
topology: v6e:2x2x1
jax: 0.10.0
libtpu: 0.0.40
codegen_flags: <defaults>
</compile_context>

<pallas_src>
import functools

import jax
import jax.numpy as jnp
from jax.experimental import pallas as pl
from jax.experimental.pallas import tpu as pltpu

D_IN = 28 * 28          # 784
H_REAL = 100
H_PAD = 128             # lane-aligned hidden dim
D_OUT_REAL = 10
D_OUT_PAD = 128         # lane-dense output width
NEG_BIG = -1e30         # padding for b2 lanes (not -inf: avoids inf-inf NaNs)


def _round_up(n, m):
    return ((n + m - 1) // m) * m


def fc_mnist_kernel(x_ref, w1_ref, b1_ref, w2_ref, b2_ref, o_ref):
    # Compute dtype follows the (pre-padded) weights: bf16 by default, f32 for
    # the strict-parity path.  Accumulation is always f32.
    cdt = w1_ref.dtype

    # Hidden layer: (TB, 784) @ (784, 128) + (1, 128), ReLU.
    x = x_ref[...].astype(cdt)                       # in-kernel cast, no extra HBM
    h = jnp.dot(x, w1_ref[...], preferred_element_type=jnp.float32)
    h = jnp.maximum(h + b1_ref[...], 0.0)

    # Output layer: (TB, 128) @ (128, 128) + (1, 128).
    logits = jnp.dot(h.astype(cdt), w2_ref[...],
                     preferred_element_type=jnp.float32)
    logits = logits + b2_ref[...]

    # Numerically-stable log_softmax over the lane axis (padded lanes carry
    # NEG_BIG from b2, so exp(shifted) == 0 there and they never win the max).
    m = jnp.max(logits, axis=1, keepdims=True)
    shifted = logits - m
    lse = jnp.log(jnp.sum(jnp.exp(shifted), axis=1, keepdims=True))
    o_ref[...] = shifted - lse


def prepare_params(w1, b1, w2, b2, matmul_dtype=jnp.bfloat16):
    """One-time lane-padding of the parameters (hoisted out of forward).

    w1: (784, 100), b1: (100,), w2: (100, 10), b2: (10,)  (i.e. torch weight.T)
    Returns (w1_p, b1_p, w2_p, b2_p) with shapes (784,128), (1,128), (128,128),
    (1,128).  Weights are stored in `matmul_dtype`; biases stay f32.
    """
    w1_p = jnp.zeros((D_IN, H_PAD), matmul_dtype).at[:, :H_REAL].set(
        w1.astype(matmul_dtype))
    b1_p = jnp.zeros((1, H_PAD), jnp.float32).at[0, :H_REAL].set(
        b1.astype(jnp.float32))
    w2_p = jnp.zeros((H_PAD, D_OUT_PAD), matmul_dtype).at[
        :H_REAL, :D_OUT_REAL].set(w2.astype(matmul_dtype))
    b2_p = jnp.full((1, D_OUT_PAD), NEG_BIG, jnp.float32).at[
        0, :D_OUT_REAL].set(b2.astype(jnp.float32))
    return w1_p, b1_p, w2_p, b2_p


def _fc_mnist_tiles(x_tiles, w1_p, b1_p, w2_p, b2_p, tb, n_tiles):
    """Runs the kernel over n_tiles batch tiles of tb rows each.

    x_tiles: (n_tiles * tb, 784) f32.  Returns (n_tiles * tb, 128) f32.
    """
    rows = n_tiles * tb
    w_bytes = w1_p.dtype.itemsize
    flops = 2 * rows * (D_IN * H_PAD + H_PAD * D_OUT_PAD)
    transcendentals = rows * (D_OUT_PAD + 1)
    bytes_accessed = (rows * D_IN * 4                                 # x streamed
                      + (D_IN * H_PAD + H_PAD * D_OUT_PAD) * w_bytes  # resident weights
                      + (H_PAD + D_OUT_PAD) * 4                       # biases
                      + rows * D_OUT_PAD * 4)                         # lane-dense output

    return pl.pallas_call(
        fc_mnist_kernel,
        out_shape=jax.ShapeDtypeStruct((rows, D_OUT_PAD), jnp.float32),
        grid=(n_tiles,),
        in_specs=[
            pl.BlockSpec((tb, D_IN), lambda i: (i, 0)),          # x tile (streamed)
            pl.BlockSpec((D_IN, H_PAD), lambda i: (0, 0)),       # w1 resident
            pl.BlockSpec((1, H_PAD), lambda i: (0, 0)),          # b1 resident
            pl.BlockSpec((H_PAD, D_OUT_PAD), lambda i: (0, 0)),  # w2 resident
            pl.BlockSpec((1, D_OUT_PAD), lambda i: (0, 0)),      # b2 resident
        ],
        out_specs=pl.BlockSpec((tb, D_OUT_PAD), lambda i: (i, 0)),
        compiler_params=pltpu.CompilerParams(
            dimension_semantics=("parallel",)),
        cost_estimate=pl.CostEstimate(
            flops=flops,
            transcendentals=transcendentals,
            bytes_accessed=bytes_accessed),
    )(x_tiles, w1_p, b1_p, w2_p, b2_p)


@functools.partial(jax.jit, static_argnames=("tb_max",))
def fc_mnist_forward(x, w1_p, b1_p, w2_p, b2_p, *, tb_max=1024):
    """x: (B, 1, 28, 28) or (B, 784) float32 -> (B, 10) log-probabilities.

    Parameters must be the lane-padded versions from prepare_params().
    """
    x2d = x.reshape(-1, D_IN).astype(jnp.float32)
    B = x2d.shape[0]

    # Tile size: large enough to amortize per-step overhead and DMA ramp,
    # small enough for default scoped VMEM on all generations, and capped at
    # ~ceil(B/2) so the parallel grid has >=2 steps (v7x has 2 TensorCores).
    half = _round_up(max(-(-B // 2), 1), 8)
    tb = max(8, min(tb_max, half))

    n_full = B // tb
    rem = B - n_full * tb

    outs = []
    if n_full > 0:
        # Main call: complete tiles, no padding / copying of x at all.
        out_main = _fc_mnist_tiles(
            x2d[:n_full * tb], w1_p, b1_p, w2_p, b2_p, tb, n_full)
        outs.append(out_main[:, :D_OUT_REAL])
    if rem > 0:
        # Tail call: only the <=tb-row remainder is (zero-)padded, a tiny copy.
        rem_pad = _round_up(rem, 8)
        x_tail = x2d[n_full * tb:]
        if rem_pad != rem:
            x_tail = jnp.pad(x_tail, ((0, rem_pad - rem), (0, 0)))
        out_tail = _fc_mnist_tiles(
            x_tail, w1_p, b1_p, w2_p, b2_p, rem_pad, 1)
        outs.append(out_tail[:rem, :D_OUT_REAL])

    if len(outs) == 1:
        return outs[0]
    return jnp.concatenate(outs, axis=0)


def init_params(key):
    """Mimics PyTorch nn.Linear default init U(-1/sqrt(fan_in), 1/sqrt(fan_in))."""
    k1, k2, k3, k4 = jax.random.split(key, 4)
    bound1 = 1.0 / jnp.sqrt(D_IN)
    bound2 = 1.0 / jnp.sqrt(H_REAL)
    # Stored as (in_features, out_features): equivalent to torch weight.T
    w1 = jax.random.uniform(k1, (D_IN, H_REAL), jnp.float32, -bound1, bound1)
    b1 = jax.random.uniform(k2, (H_REAL,), jnp.float32, -bound1, bound1)
    w2 = jax.random.uniform(k3, (H_REAL, D_OUT_REAL), jnp.float32, -bound2, bound2)
    b2 = jax.random.uniform(k4, (D_OUT_REAL,), jnp.float32, -bound2, bound2)
    return w1, b1, w2, b2


if __name__ == "__main__":
    key = jax.random.PRNGKey(0)
    pkey, xkey = jax.random.split(key)
    w1, b1, w2, b2 = init_params(pkey)

    # Small MNIST-like batch: (B, C, H, W) = (2, 1, 28, 28)
    x = jax.random.normal(xkey, (2, 1, 28, 28), jnp.float32)

    # Pure-JAX f32 reference.
    x2d = x.reshape(-1, D_IN)
    h_ref = jnp.maximum(x2d @ w1 + b1, 0.0)
    ref = jax.nn.log_softmax(h_ref @ w2 + b2, axis=1)

    # Default fast path: bf16 MXU operands, f32 accumulation (relaxed tol).
    params_bf16 = prepare_params(w1, b1, w2, b2)                 # bf16 weights
    out = jax.block_until_ready(fc_mnist_forward(x, *params_bf16))
    assert out.shape == (2, D_OUT_REAL), out.shape
    assert bool(jnp.all(jnp.isfinite(out)))
    assert jnp.allclose(out, ref, atol=2e-2, rtol=2e-2), \
        float(jnp.max(jnp.abs(out - ref)))

    # Parity path: f32 operands throughout (tight tolerance).
    params_f32 = prepare_params(w1, b1, w2, b2, matmul_dtype=jnp.float32)
    out_f32 = jax.block_until_ready(fc_mnist_forward(x, *params_f32))
    assert jnp.allclose(out_f32, ref, atol=1e-5, rtol=1e-5), \
        float(jnp.max(jnp.abs(out_f32 - ref)))

    print("KERNEL_OK")
</pallas_src>

<mosaic_0001>
module attributes {stable_mosaic.version = 11 : i64} {
  func.func @fc_mnist_kernel(%arg0: i32, %arg1: memref<8x784xf32, #tpu.memory_space<vmem>>, %arg2: memref<784x128xbf16, #tpu.memory_space<vmem>>, %arg3: memref<1x128xf32, #tpu.memory_space<vmem>>, %arg4: memref<128x128xbf16, #tpu.memory_space<vmem>>, %arg5: memref<1x128xf32, #tpu.memory_space<vmem>>, %arg6: memref<8x128xf32, #tpu.memory_space<vmem>>) attributes {dimension_semantics = [#tpu.dimension_semantics<parallel>], iteration_bounds = array<i64: 1>, scalar_prefetch = 0 : i64, scratch_operands = 0 : i64, tpu.core_type = #tpu.core_type<tc>, window_params = [{transform_indices = @transform_0, window_bounds = array<i64: 8, 784>}, {pipeline_mode = #tpu.pipeline_mode<synchronous>, transform_indices = @transform_1, window_bounds = array<i64: 784, 128>}, {pipeline_mode = #tpu.pipeline_mode<synchronous>, transform_indices = @transform_2, window_bounds = array<i64: 1, 128>}, {pipeline_mode = #tpu.pipeline_mode<synchronous>, transform_indices = @transform_3, window_bounds = array<i64: 128, 128>}, {pipeline_mode = #tpu.pipeline_mode<synchronous>, transform_indices = @transform_4, window_bounds = array<i64: 1, 128>}, {transform_indices = @transform_5, window_bounds = array<i64: 8, 128>}]} {
    %c0 = arith.constant 0 : index
    %c0_0 = arith.constant 0 : index
    %0 = vector.load %arg1[%c0, %c0_0] : memref<8x784xf32, #tpu.memory_space<vmem>>, vector<8x784xf32>
    %1 = arith.truncf %0 : vector<8x784xf32> to vector<8x784xbf16>
    %c0_1 = arith.constant 0 : index
    %c0_2 = arith.constant 0 : index
    %2 = vector.load %arg2[%c0_1, %c0_2] : memref<784x128xbf16, #tpu.memory_space<vmem>>, vector<784x128xbf16>
    %cst = arith.constant dense<0.000000e+00> : vector<8x128xf32>
    %3 = tpu.matmul %1, %2, %cst {dimension_numbers = #tpu.dot_dimension_numbers<[1], [0], [0], [1], [0, 0, 1, 1], [], []>} : vector<8x784xbf16>, vector<784x128xbf16>, vector<8x128xf32> -> vector<8x128xf32>
    %c0_3 = arith.constant 0 : index
    %c0_4 = arith.constant 0 : index
    %4 = vector.load %arg3[%c0_3, %c0_4] : memref<1x128xf32, #tpu.memory_space<vmem>>, vector<1x128xf32>
    %5 = vector.broadcast %4 : vector<1x128xf32> to vector<8x128xf32>
    %6 = arith.addf %3, %5 : vector<8x128xf32>
    %cst_5 = arith.constant 0.000000e+00 : f32
    %7 = vector.broadcast %cst_5 : f32 to vector<8x128xf32>
    %8 = arith.maximumf %6, %7 : vector<8x128xf32>
    %9 = arith.truncf %8 : vector<8x128xf32> to vector<8x128xbf16>
    %c0_6 = arith.constant 0 : index
    %c0_7 = arith.constant 0 : index
    %10 = vector.load %arg4[%c0_6, %c0_7] : memref<128x128xbf16, #tpu.memory_space<vmem>>, vector<128x128xbf16>
    %cst_8 = arith.constant dense<0.000000e+00> : vector<8x128xf32>
    %11 = tpu.matmul %9, %10, %cst_8 {dimension_numbers = #tpu.dot_dimension_numbers<[1], [0], [0], [1], [0, 0, 1, 1], [], []>} : vector<8x128xbf16>, vector<128x128xbf16>, vector<8x128xf32> -> vector<8x128xf32>
    %c0_9 = arith.constant 0 : index
    %c0_10 = arith.constant 0 : index
    %12 = vector.load %arg5[%c0_9, %c0_10] : memref<1x128xf32, #tpu.memory_space<vmem>>, vector<1x128xf32>
    %13 = vector.broadcast %12 : vector<1x128xf32> to vector<8x128xf32>
    %14 = arith.addf %11, %13 : vector<8x128xf32>
    %cst_11 = arith.constant dense<0xFF800000> : vector<8xf32>
    %15 = vector.multi_reduction <maximumf>, %14, %cst_11 [1] : vector<8x128xf32> to vector<8xf32>
    %16 = vector.shape_cast %15 : vector<8xf32> to vector<8x1xf32>
    %17 = vector.broadcast %16 : vector<8x1xf32> to vector<8x128xf32>
    %18 = arith.subf %14, %17 : vector<8x128xf32>
    %19 = math.exp %18 : vector<8x128xf32>
    %cst_12 = arith.constant dense<0.000000e+00> : vector<8xf32>
    %20 = vector.multi_reduction <add>, %19, %cst_12 [1] : vector<8x128xf32> to vector<8xf32>
    %21 = vector.shape_cast %20 : vector<8xf32> to vector<8x1xf32>
    %22 = math.log %21 : vector<8x1xf32>
    %23 = vector.broadcast %22 : vector<8x1xf32> to vector<8x128xf32>
    %24 = arith.subf %18, %23 : vector<8x128xf32>
    %c0_13 = arith.constant 0 : index
    %c0_14 = arith.constant 0 : index
    %25 = vector.load %arg6[%c0_13, %c0_14] : memref<8x128xf32, #tpu.memory_space<vmem>>, vector<8x128xf32>
    tpu.vector_store %arg6[%c0_13, %c0_14], %24 {strides = array<i32>} : memref<8x128xf32, #tpu.memory_space<vmem>>, vector<8x128xf32>,
    return
  }
  func.func @transform_0(%arg0: i32) -> (i32, i32) {
    %c0_i32 = arith.constant 0 : i32
    %c0_i32_0 = arith.constant 0 : i32
    return %arg0, %c0_i32 : i32, i32
  }
  func.func @transform_1(%arg0: i32) -> (i32, i32) {
    %c0_i32 = arith.constant 0 : i32
    %c0_i32_0 = arith.constant 0 : i32
    %c0_i32_1 = arith.constant 0 : i32
    return %c0_i32, %c0_i32_0 : i32, i32
  }
  func.func @transform_2(%arg0: i32) -> (i32, i32) {
    %c0_i32 = arith.constant 0 : i32
    %c0_i32_0 = arith.constant 0 : i32
    %c0_i32_1 = arith.constant 0 : i32
    return %c0_i32, %c0_i32_0 : i32, i32
  }
  func.func @transform_3(%arg0: i32) -> (i32, i32) {
    %c0_i32 = arith.constant 0 : i32
    %c0_i32_0 = arith.constant 0 : i32
    %c0_i32_1 = arith.constant 0 : i32
    return %c0_i32, %c0_i32_0 : i32, i32
  }
  func.func @transform_4(%arg0: i32) -> (i32, i32) {
    %c0_i32 = arith.constant 0 : i32
    %c0_i32_0 = arith.constant 0 : i32
    %c0_i32_1 = arith.constant 0 : i32
    return %c0_i32, %c0_i32_0 : i32, i32
  }
  func.func @transform_5(%arg0: i32) -> (i32, i32) {
    %c0_i32 = arith.constant 0 : i32
    %c0_i32_0 = arith.constant 0 : i32
    return %arg0, %c0_i32 : i32, i32
  }
}

</mosaic_0001>

<bundles_post_ra>
// kernel: fc_mnist_forward.1
= control target key start
LH: loop header
LB: loop body
LE: loop exit
PB: predicated region body
PF: predicated region fallthrough
CT: control target
= control target key end

     0   :  { %10 = vsyncpa [#allocation3], 0  ;;  %s992_s18 = smov [#allocation2]   ;;  %s1097_s0 = inlined_call_operand.vmem [shape: f32[8,784], index: 0, kind: input, shape index: {}]   ;;  %s1098_s1 = inlined_call_operand.hbm [shape: bf16[784,128], index: 1, kind: input, shape index: {}]   ;;  %s1099_s2 = inlined_call_operand.vmem [shape: f32[1,128], index: 2, kind: input, shape index: {}]   ;;  %s1100_s3 = inlined_call_operand.vmem [shape: bf16[128,128], index: 3, kind: input, shape index: {}]   ;;  %s1101_s4 = inlined_call_operand.vmem [shape: f32[1,128], index: 4, kind: input, shape index: {}]   ;;  %s1102_s5 = inlined_call_operand.vmem [shape: f32[8,128], index: 5, kind: output, shape index: {}]  }
   0x1   :  { %s18_s19 = sshll.u32 %s992_s18, 4  ;;  %s19_s19 = int_to_ptr.vmem [resolvable:$true] %s18_s19 }
   0x2   :  { %s978_s20 = scalar_lea.vmem %s19_s19, 6272  ;;  %p983_p1 = scmp.lt.s32.totalorder %s19_s19, %s19_s19 }
   0x3   :  { %p979_p0 = scmp.ne.s32.totalorder %s19_s19, %s978_s20  ;;  %p984_p2 = scmp.lt.s32.totalorder %s978_s20, %s978_s20 }
   0x5   :  { %p985_p3 = por %p984_p2, %p983_p1 }
   0x7   :  { %p986_p4 = pnand %p985_p3, %p979_p0 }
   0x9   :  { %989 = shalt.err (!%p986_p4)
}
   0xa   :  { %s993_s21 = smov 64   ;;  %s994_s22 = smov 4  }
   0xb   :  { %24 = dma.hbm_to_vmem [thread:$0]  %s1098_s1, 6272, %s19_s19, [#allocation3], %s993_s21, %s993_s21, %s994_s22  }
   0xc   :  { %990 = dma.done.wait [#allocation3], 6272  }
   0xd   :  { %991 = vsyncadd [#allocation3], 4294961024  ;;  %v909_v0 = vld [vmem:[#allocation2 + $0x78] sm:$0xff]   ;;  %v913_v4 = vld [vmem:[#allocation2 + $0x70] sm:$0xff]   ;;  %v995_v44 = vmov 0.0   ;;  %vm996_vm0 = vmmov 0  }
   0xe   :  { %v910_v1 = vld [vmem:[#allocation2 + $0x38] sm:$0xff]   ;;  %801 = vmatprep.subr.bf16.mxu0 %v909_v0  ;;  %v914_v5 = vld [vmem:[#allocation2 + $0x30] sm:$0xff]   ;;  %v917_v8 = vld [vmem:[#allocation2 + $0x68] sm:$0xff]   ;;  %vm448_vm1 = vcmask 130048  }
   0xf   :  { %v911_v2 = vld [vmem:[#allocation2 + $0xf8] sm:$0xff]   ;;  %802 = vmatpush3.bf16.msra.mxu0 %v910_v1  ;;  %v915_v6 = vld [vmem:[#allocation2 + $0xf0] sm:$0xff]   ;;  %v918_v9 = vld [vmem:[#allocation2 + $0x28] sm:$0xff]  }
  0x10   :  { %v912_v3 = vld [vmem:[#allocation2 + $0xb8] sm:$0xff]   ;;  %823 = vmatprep.subr.bf16.mxu1 %v911_v2  ;;  %803 = vmatprep.subr.bf16.mxu0 %v913_v4  ;;  %v916_v7 = vld [vmem:[#allocation2 + $0xb0] sm:$0xff]   ;;  %v919_v10 = vld [vmem:[#allocation2 + $0xe8] sm:$0xff]  }
  0x11   :  { %824 = vmatpush3.bf16.msra.mxu1 %v912_v3  ;;  %v920_v11 = vld [vmem:[#allocation2 + $0xa8] sm:$0xff]   ;;  %v921_v12 = vld [vmem:[#allocation2 + $0x60] sm:$0xff]   ;;  %v925_v16 = vld [vmem:[#allocation2 + $0x58] sm:$0xff]  }
  0x12   :  { %825 = vmatprep.subr.bf16.mxu1 %v915_v6  ;;  %v922_v13 = vld [vmem:[#allocation2 + $0x20] sm:$0xff]   ;;  %v926_v17 = vld [vmem:[#allocation2 + $0x18] sm:$0xff]   ;;  %v929_v20 = vld [vmem:[#allocation2 + $0x50] sm:$0xff]  }
  0x13   :  { %804 = vmatpush3.bf16.msra.mxu0 %v914_v5  ;;  %v923_v14 = vld [vmem:[#allocation2 + $0xe0] sm:$0xff]   ;;  %v927_v18 = vld [vmem:[#allocation2 + $0xd8] sm:$0xff]   ;;  %v930_v21 = vld [vmem:[#allocation2 + $0x10] sm:$0xff]  }
  0x14   :  { %805 = vmatprep.subr.bf16.mxu0 %v917_v8  ;;  %v924_v15 = vld [vmem:[#allocation2 + $0xa0] sm:$0xff]   ;;  %v928_v19 = vld [vmem:[#allocation2 + $0x98] sm:$0xff]   ;;  %v931_v22 = vld [vmem:[#allocation2 + $0xd0] sm:$0xff]  }
  0x15   :  { %826 = vmatpush3.bf16.msra.mxu1 %v916_v7  ;;  %v932_v23 = vld [vmem:[#allocation2 + $0x90] sm:$0xff]   ;;  %v933_v24 = vld [vmem:[#allocation2 + $0x48] sm:$0xff]   ;;  %v937_v28 = vld [vmem:[#allocation2 + $0x40] sm:$0xff]  }
  0x16   :  { %827 = vmatprep.subr.bf16.mxu1 %v919_v10  ;;  %v934_v25 = vld [vmem:[#allocation2 + $0x8] sm:$0xff]   ;;  %v938_v29 = vld [vmem:[#allocation2] sm:$0xff]   ;;  %v941_v36 = vld [vmem:[#allocation2 + $0x178] sm:$0xff]  }
  0x17   :  { %806 = vmatpush3.bf16.msra.mxu0 %v918_v9  ;;  %v935_v26 = vld [vmem:[#allocation2 + $0xc8] sm:$0xff]   ;;  %v939_v30 = vld [vmem:[#allocation2 + $0xc0] sm:$0xff]   ;;  %v38_v37 = vld [vmem:[%s1097_s0 + $0x18] sm:$0xff] }
  0x18   :  { %807 = vmatprep.subr.bf16.mxu0 %v921_v12  ;;  %v936_v27 = vld [vmem:[#allocation2 + $0x88] sm:$0xff]   ;;  %v940_v33 = vld [vmem:[#allocation2 + $0x80] sm:$0xff]   ;;  %v45_v38 = vpack.c.bf16 %v38_v37, %v38_v37  ;;  %v942_v39 = vld [vmem:[#allocation2 + $0x138] sm:$0xff]  }
  0x19   :  { %828 = vmatpush3.bf16.msra.mxu1 %v920_v11  ;;  %v36_v31 = vld [vmem:[%s1097_s0 + $0x8] sm:$0xff]  ;;  %v35_v34 = vld [vmem:[%s1097_s0] sm:$0xff]  ;;  %v37_v40 = vld [vmem:[%s1097_s0 + $0x10] sm:$0xff] }
  0x1a   :  { %829 = vmatprep.subr.bf16.mxu1 %v923_v14  ;;  %v43_v32 = vpack.c.bf16 %v36_v31, %v36_v31  ;;  %v42_v35 = vpack.c.bf16 %v35_v34, %v35_v34  ;;  %524 = vmatprep.mubr.bf16.mxu1 %v45_v38  ;;  %v44_v41 = vpack.c.bf16 %v37_v40, %v37_v40  ;;  %v943_v42 = vld [vmem:[#allocation2 + $0x170] sm:$0xff]   ;;  %v945_v45 = vld [vmem:[#allocation2 + $0x168] sm:$0xff]   ;;  %v947_v47 = vld [vmem:[#allocation2 + $0x160] sm:$0xff]  }
  0x1b   :  { %808 = vmatpush3.bf16.msra.mxu0 %v922_v13  ;;  %v944_v43 = vld [vmem:[#allocation2 + $0x130] sm:$0xff]   ;;  %v946_v46 = vld [vmem:[#allocation2 + $0x128] sm:$0xff]   ;;  %v948_v48 = vld [vmem:[#allocation2 + $0x120] sm:$0xff]  }
  0x1c   :  { %809 = vmatprep.subr.bf16.mxu0 %v925_v16  ;;  %484 = vmatprep.mubr.bf16.mxu0 %v43_v32  ;;  %v949_v49 = vld [vmem:[#allocation2 + $0x158] sm:$0xff]   ;;  %v951_v51 = vld [vmem:[#allocation2 + $0x150] sm:$0xff]   ;;  %v957_v53 = vld [vmem:[#allocation2 + $0x180] sm:$0xff]  }
  0x1d   :  { %830 = vmatpush3.bf16.msra.mxu1 %v924_v15  ;;  %v950_v50 = vld [vmem:[#allocation2 + $0x118] sm:$0xff]   ;;  %v952_v52 = vld [vmem:[#allocation2 + $0x110] sm:$0xff]   ;;  %v40_v54 = vld [vmem:[%s1097_s0 + $0x28] sm:$0xff] }
  0x1e   :  { %831 = vmatprep.subr.bf16.mxu1 %v927_v18  ;;  %v953_v55 = vld [vmem:[#allocation2 + $0x148] sm:$0xff]   ;;  %v47_v56 = vpack.c.bf16 %v40_v54, %v40_v54  ;;  %v41_v57 = vld [vmem:[%s1097_s0 + $0x30] sm:$0xff]  ;;  %v955_v60 = vld [vmem:[#allocation2 + $0x140] sm:$0xff]  }
  0x1f   :  { %810 = vmatpush3.bf16.msra.mxu0 %v926_v17  ;;  %v48_v58 = vpack.c.bf16 %v41_v57, %v41_v57  ;;  %v954_v59 = vld [vmem:[#allocation2 + $0x108] sm:$0xff]   ;;  %v956_v61 = vld [vmem:[#allocation2 + $0x100] sm:$0xff]   ;;  %v958_v0 = vld [vmem:[%s1100_s3 + $0x38] sm:$0xff]  }
  0x20   :  { %811 = vmatprep.subr.bf16.mxu0 %v929_v20  ;;  %v39_v62 = vld [vmem:[%s1097_s0 + $0x20] sm:$0xff]  ;;  %v959_v1 = vld [vmem:[%s1100_s3 + $0x30] sm:$0xff]   ;;  %v960_v2 = vld [vmem:[%s1100_s3 + $0x28] sm:$0xff]  }
  0x21   :  { %832 = vmatpush3.bf16.msra.mxu1 %v928_v19  ;;  %v46_v63 = vpack.c.bf16 %v39_v62, %v39_v62  ;;  %v961_v3 = vld [vmem:[%s1100_s3 + $0x20] sm:$0xff]   ;;  %v962_v4 = vld [vmem:[%s1100_s3 + $0x18] sm:$0xff]   ;;  %v963_v5 = vld [vmem:[%s1100_s3 + $0x10] sm:$0xff]  }
  0x22   :  { %833 = vmatprep.subr.bf16.mxu1 %v931_v22  ;;  %v964_v6 = vld [vmem:[%s1100_s3 + $0x8] sm:$0xff]   ;;  %v965_v7 = vld [vmem:[%s1100_s3] sm:$0xff]  }
  0x23   :  { %812 = vmatpush3.bf16.msra.mxu0 %v930_v21  ;;  %v741_v21 = vld [vmem:[%s1099_s2] ss:$0 sm:$0xff] }
  0x24   :  { %813 = vmatprep.subr.bf16.mxu0 %v933_v24  ;;  %v792_v34 = vld [vmem:[%s1101_s4] ss:$0 sm:$0xff] }
  0x25   :  { %834 = vmatpush3.bf16.msra.mxu1 %v932_v23 }
  0x26   :  { %835 = vmatprep.subr.bf16.mxu1 %v935_v26 }
  0x27   :  { %814 = vmatpush3.bf16.msra.mxu0 %v934_v25 }
  0x28   :  { %815 = vmatprep.subr.bf16.mxu0 %v937_v28 }
  0x29   :  { %836 = vmatpush3.bf16.msra.mxu1 %v936_v27 }
  0x2a   :  { %837 = vmatprep.subr.bf16.mxu1 %v939_v30 }
  0x2b   :  { %816 = vmatpush3.bf16.msra.mxu0 %v938_v29 }
  0x2c   :  { %845 = vmatprep.subr.bf16.mxu0 %v941_v36 }
  0x2d   :  { %838 = vmatpush3.bf16.msra.mxu1 %v940_v33 }
  0x2e   :  { %485 = vmatmul.mubr.bf16.vlgmr.msra.gmra.mxu0 %v42_v35  ;;  %878 = vmatprep.subr.bf16.mxu1 %v995_v44 }
  0x2f   :  { %846 = vmatpush3.bf16.msra.mxu0 %v942_v39  ;;  %564 = vmatprep.mubr.bf16.mxu0 %v47_v56 }
  0x30   :  { %525 = vmatmul.mubr.bf16.vlgmr.msra.gmra.mxu1 %v44_v41  ;;  %847 = vmatprep.subr.bf16.mxu0 %v943_v42 }
  0x31   :  { %880 = vmatprep.mubr.msk.bf16.mxu1 %vm996_vm0, %v995_v44  ;;  %879 = vmatpush3.bf16.msra.mxu1 %v957_v53 }
  0x32   :  { %884 = vmatprep.subr.bf16.mxu1 %v995_v44 }
  0x33   :  { %848 = vmatpush3.bf16.msra.mxu0 %v944_v43 }
  0x34   :  { %849 = vmatprep.subr.bf16.mxu0 %v945_v45 }
  0x37   :  { %850 = vmatpush3.bf16.msra.mxu0 %v946_v46 }
  0x38   :  { %851 = vmatprep.subr.bf16.mxu0 %v947_v47  ;;  %881 = vmatmul.mubr.msk.bf16.vlgmr.msra.gmra.mxu1 %vm448_vm1, %v48_v58 }
  0x39   :  { %900 = vmatprep.mubr.msk.bf16.mxu1 %vm996_vm0, %v995_v44  ;;  %885 = vmatpush3.bf16.msra.mxu1 %v958_v0 }
  0x3a   :  { %886 = vmatprep.subr.bf16.mxu1 %v995_v44 }
  0x3b   :  { %852 = vmatpush3.bf16.msra.mxu0 %v948_v48 }
  0x3c   :  { %853 = vmatprep.subr.bf16.mxu0 %v949_v49 }
  0x3d   :  { %887 = vmatpush3.bf16.msra.mxu1 %v959_v1 }
  0x3e   :  { %888 = vmatprep.subr.bf16.mxu1 %v995_v44 }
  0x3f   :  { %854 = vmatpush3.bf16.msra.mxu0 %v950_v50 }
  0x40   :  { %855 = vmatprep.subr.bf16.mxu0 %v951_v51 }
  0x41   :  { %889 = vmatpush3.bf16.msra.mxu1 %v960_v2 }
  0x42   :  { %890 = vmatprep.subr.bf16.mxu1 %v995_v44 }
  0x43   :  { %856 = vmatpush3.bf16.msra.mxu0 %v952_v52 }
  0x44   :  { %857 = vmatprep.subr.bf16.mxu0 %v953_v55 }
  0x45   :  { %891 = vmatpush3.bf16.msra.mxu1 %v961_v3 }
  0x46   :  { %892 = vmatprep.subr.bf16.mxu1 %v995_v44 }
  0x47   :  { %858 = vmatpush3.bf16.msra.mxu0 %v954_v59 }
  0x48   :  { %859 = vmatprep.subr.bf16.mxu0 %v955_v60 }
  0x49   :  { %893 = vmatpush3.bf16.msra.mxu1 %v962_v4 }
  0x4a   :  { %894 = vmatprep.subr.bf16.mxu1 %v995_v44 }
  0x4b   :  { %860 = vmatpush3.bf16.msra.mxu0 %v956_v61 }
  0x4d   :  { %895 = vmatpush3.bf16.msra.mxu1 %v963_v5 }
  0x4e   :  { %565 = vmatmul.mubr.bf16.vlgmr.msra.gmra.mxu0 %v46_v63  ;;  %896 = vmatprep.subr.bf16.mxu1 %v995_v44 }
  0x51   :  { %897 = vmatpush3.bf16.msra.mxu1 %v964_v6 }
  0x52   :  { %898 = vmatprep.subr.bf16.mxu1 %v995_v44 }
  0x55   :  { %899 = vmatpush3.bf16.msra.mxu1 %v965_v7 }
  0xee   :  { %v817_v8 = vpop.f32.mrf.mxu0 }
  0xf0   :  { %v818_v9 = vpop.f32.mrf.mxu0  ;;  %v839_v10 = vpop.f32.mrf.mxu1 }
  0xf1   :  { %v819_v20 = vadd.f32 %v818_v9, %v817_v8 }
  0xf2   :  { %v820_v11 = vpop.f32.mrf.mxu0  ;;  %v840_v12 = vpop.f32.mrf.mxu1 }
  0xf3   :  { %v487_v22 = vadd.f32 %v819_v20, %v741_v21  ;;  %v841_v23 = vadd.f32 %v840_v12, %v839_v10 }
  0xf4   :  { %v821_v13 = vpop.f32.mrf.mxu0  ;;  %v842_v14 = vpop.f32.mrf.mxu1 }
  0xf5   :  { %v527_v26 = vadd.f32 %v841_v23, %v487_v22 }
  0xf6   :  { %v843_v15 = vpop.f32.mrf.mxu1 }
  0xf8   :  { %v606_v16 = vpop.f32.mrf.mxu1 }
  0xfa   :  { %v882_v17 = vpop.f32.mrf.mxu1 }
  0xfc   :  { %v609_v18 = vpop.f32.mrf.mxu1 }
  0xfe   :  { %v883_v19 = vpop.f32.mrf.mxu1 }
 0x10e   :  { %v861_v24 = vpop.f32.mrf.mxu0 }
 0x110   :  { %v862_v25 = vpop.f32.mrf.mxu0 }
 0x111   :  { %v863_v27 = vadd.f32 %v862_v25, %v861_v24 }
 0x112   :  { %v864_v28 = vpop.f32.mrf.mxu0 }
 0x113   :  { %v567_v29 = vadd.f32 %v863_v27, %v527_v26 }
 0x114   :  { %v865_v30 = vpop.f32.mrf.mxu0 }
 0x115   :  { %v607_v31 = vadd.f32 %v606_v16, %v567_v29 }
 0x117   :  { %v612_v32 = vmax.f32 %v607_v31, 0.0 }
 0x119   :  { %v613_v33 = vpack.c.bf16 %v612_v32, %v612_v32 }
 0x11b   :  { %901 = vmatmul.mubr.bf16.vlgmr.msra.gmra.mxu1 %v613_v33 }
 0x1db   :  { %v719_v35 = vpop.f32.mrf.mxu1 }
 0x1dc   :  { %v720_v36 = vadd.f32 %v792_v34, %v719_v35 }
 0x1dd   :  { %v902_v37 = vpop.f32.mrf.mxu1 }
 0x1de   :  { %725 = vmax.xlane.f32.xlu0 %v720_v36 }
 0x1df   :  { %v722_v38 = vpop.f32.mrf.mxu1 }
 0x1e1   :  { %v903_v39 = vpop.f32.mrf.mxu1 }
 0x267   :  { %v726_v40 = vpop.xlane.xlu0 %725 }
 0x268   :  { %v727_v41 = vsub.f32 %v720_v36, %v726_v40 }
 0x26a   :  { %v728_v42 = vmul.f32 1.442695, %v727_v41 }
 0x26c   :  { %966 = vpow2.f32 %v728_v42 }
 0x279   :  { %v967_v43 = vpop.eup %966 }
 0x27a   :  { %730 = vadd.xlane.f32.xlu0 %v967_v43 }
 0x303   :  { %v731_v44 = vpop.xlane.xlu0 %730 }
 0x304   :  { %968 = vlog2.f32 %v731_v44 }
 0x311   :  { %v969_v45 = vpop.eup %968 }
 0x312   :  { %v733_v46 = vmul.f32 0.6931472, %v969_v45 }
 0x314   :  { %v734_v47 = vsub.f32 %v727_v41, %v733_v46 }
 0x316   :  { %735 = vst [vmem:[%s1102_s5] sm:$0xff] %v734_v47 }
 0x317   :  { %740 = vsyncpa [#allocation3], 1 }

</bundles_post_ra>
